<compile_context>
chip_gen: v7x
topology: tpu7x:2x2x1
jax: 0.10.0
libtpu: 0.0.40
codegen_flags: <defaults>
</compile_context>

<pallas_src>
import functools

import jax
import jax.numpy as jnp
from jax import lax
from jax.experimental import pallas as pl
from jax.experimental.pallas import tpu as pltpu

EPS = 1e-12  # matches SpectralNorm.l2normalize default


# ---------------------------------------------------------------------------
# Fused kernel: power iteration (+ u/v update) + normalized linear forward.
# ---------------------------------------------------------------------------
def _fused_spectral_norm_linear_kernel(x_ref, w_ref, b_ref, u_ref, v_ref,
                                       y_ref, u_out_ref, v_out_ref,
                                       *, power_iterations):
    w = w_ref[...]      # (H, Wd)  weight_bar viewed as (height, width); lane-dense
    u = u_ref[...]      # (H, 1)   column vector
    v = v_ref[...]      # (1, Wd)  row vector

    # Un-normalized W.v from the most recent u-update; reused below for sigma.
    wv = None

    # Static unroll; power_iterations is small (default 1).
    for _ in range(power_iterations):
        # v <- l2normalize(W^T u): broadcast u down the columns, sublane reduce.
        wtu = jnp.sum(w * u, axis=0, keepdims=True)                   # (1, Wd)
        v = wtu * (1.0 / (jnp.sqrt(jnp.sum(wtu * wtu)) + EPS))
        # u <- l2normalize(W v): broadcast v across rows, cross-lane (XLU) reduce.
        wv = jnp.sum(w * v, axis=1, keepdims=True)                    # (H, 1)
        u = wv * (1.0 / (jnp.sqrt(jnp.sum(wv * wv)) + EPS))

    if wv is None:  # power_iterations == 0: sigma still needs W.v once.
        wv = jnp.sum(w * v, axis=1, keepdims=True)

    # sigma = u . (W v); the last loop step already computed W.v with the final
    # v, so no (H, Wd) recompute is needed.
    sigma = jnp.sum(u * wv)
    inv_sigma = 1.0 / sigma                                           # exact scalar

    # Wrapped nn.Linear forward with the normalized weight, without ever
    # materializing W / sigma:  y = (x @ W^T) * (1/sigma) + b.
    y = lax.dot_general(x_ref[...], w, (((1,), (1,)), ((), ())),
                        preferred_element_type=jnp.float32)
    y_ref[...] = (y * inv_sigma + b_ref[...]).astype(y_ref.dtype)
    u_out_ref[...] = u.astype(u_out_ref.dtype)
    v_out_ref[...] = v.astype(v_out_ref.dtype)


@functools.partial(jax.jit, static_argnames=("power_iterations",))
def spectral_norm_linear_forward(x, w_bar, b, u, v, power_iterations=1):
    """Fused SpectralNorm(nn.Linear).forward: returns (y, u_new, v_new)."""
    height = w_bar.shape[0]                              # out_features
    w2 = w_bar.reshape(height, -1).astype(jnp.float32)   # (H, Wd)
    width = w2.shape[1]                                  # in_features
    batch = x.shape[0]

    kernel = functools.partial(_fused_spectral_norm_linear_kernel,
                               power_iterations=power_iterations)

    # Everything is single-block VMEM resident (grid=(1,)); ~20 KiB total at
    # the demo shapes, so no tiling and no multi-buffering concerns here.
    y, u_new, v_new = pl.pallas_call(
        kernel,
        out_shape=(
            jax.ShapeDtypeStruct((batch, height), jnp.float32),
            jax.ShapeDtypeStruct((height, 1), jnp.float32),
            jax.ShapeDtypeStruct((1, width), jnp.float32),
        ),
        grid_spec=pltpu.PrefetchScalarGridSpec(
            num_scalar_prefetch=0,
            grid=(1,),
            in_specs=[
                pl.BlockSpec((batch, width), lambda i: (0, 0)),     # x
                pl.BlockSpec((height, width), lambda i: (0, 0)),    # w_bar
                pl.BlockSpec((1, height), lambda i: (0, 0)),        # b
                pl.BlockSpec((height, 1), lambda i: (0, 0)),        # u
                pl.BlockSpec((1, width), lambda i: (0, 0)),         # v
            ],
            out_specs=(
                pl.BlockSpec((batch, height), lambda i: (0, 0)),    # y
                pl.BlockSpec((height, 1), lambda i: (0, 0)),        # u_new
                pl.BlockSpec((1, width), lambda i: (0, 0)),         # v_new
            ),
        ),
        # Persistent power-iteration buffers updated in place (register_buffer
        # semantics): u input -> u_new output, v input -> v_new output.
        input_output_aliases={3: 1, 4: 2},
        compiler_params=pltpu.CompilerParams(
            dimension_semantics=("arbitrary",)),
    )(x.astype(jnp.float32), w2,
      b.reshape(1, height).astype(jnp.float32),
      u.reshape(height, 1).astype(jnp.float32),
      v.reshape(1, width).astype(jnp.float32))

    return y, u_new.reshape(height), v_new.reshape(width)


# ---------------------------------------------------------------------------
# Pure-JAX reference mirroring the PyTorch forward (for validation).
# ---------------------------------------------------------------------------
def _reference_forward(x, w_bar, b, u, v, power_iterations=1, eps=EPS):
    height = w_bar.shape[0]
    w2 = w_bar.reshape(height, -1)

    def l2n(t):
        return t / (jnp.linalg.norm(t) + eps)

    for _ in range(power_iterations):
        v = l2n(w2.T @ u)
        u = l2n(w2 @ v)
    sigma = u @ (w2 @ v)
    w_n = (w2 / sigma).reshape(w_bar.shape)
    y = x @ w_n.T + b
    return y, u, v


if __name__ == "__main__":
    key = jax.random.PRNGKey(0)
    kw, ku, kv, kx, kb = jax.random.split(key, 5)

    # SpectralNorm(nn.Linear(in_features=128, out_features=32)), batch=8.
    batch, in_features, out_features = 8, 128, 32
    w_bar = jax.random.normal(kw, (out_features, in_features), jnp.float32)
    bias = jax.random.normal(kb, (out_features,), jnp.float32)
    x = jax.random.normal(kx, (batch, in_features), jnp.float32)

    # _make_params(): u, v are N(0,1) then l2-normalized.
    u0 = jax.random.normal(ku, (out_features,), jnp.float32)
    v0 = jax.random.normal(kv, (in_features,), jnp.float32)
    u0 = u0 / (jnp.linalg.norm(u0) + EPS)
    v0 = v0 / (jnp.linalg.norm(v0) + EPS)

    y, u_new, v_new = spectral_norm_linear_forward(x, w_bar, bias, u0, v0,
                                                   power_iterations=1)
    jax.block_until_ready((y, u_new, v_new))

    y_ref, u_ref, v_ref = _reference_forward(x, w_bar, bias, u0, v0,
                                             power_iterations=1)
    assert jnp.allclose(y, y_ref, rtol=2e-4, atol=1e-5), (y, y_ref)
    assert jnp.allclose(u_new, u_ref, rtol=2e-4, atol=1e-5)
    assert jnp.allclose(v_new, v_ref, rtol=2e-4, atol=1e-5)
    print("KERNEL_OK")
</pallas_src>

<mosaic_0001>
module attributes {stable_mosaic.version = 11 : i64} {
  func.func @_fused_spectral_norm_linear_kernel(%arg0: i32, %arg1: memref<8x128xf32, #tpu.memory_space<vmem>>, %arg2: memref<32x128xf32, #tpu.memory_space<vmem>>, %arg3: memref<1x32xf32, #tpu.memory_space<vmem>>, %arg4: memref<32x1xf32, #tpu.memory_space<vmem>>, %arg5: memref<1x128xf32, #tpu.memory_space<vmem>>, %arg6: memref<8x32xf32, #tpu.memory_space<vmem>>, %arg7: memref<32x1xf32, #tpu.memory_space<vmem>>, %arg8: memref<1x128xf32, #tpu.memory_space<vmem>>) attributes {dimension_semantics = [#tpu.dimension_semantics<arbitrary>], iteration_bounds = array<i64: 1>, scalar_prefetch = 0 : i64, scratch_operands = 0 : i64, tpu.core_type = #tpu.core_type<tc>, window_params = [{pipeline_mode = #tpu.pipeline_mode<synchronous>, transform_indices = @transform_0, window_bounds = array<i64: 8, 128>}, {pipeline_mode = #tpu.pipeline_mode<synchronous>, transform_indices = @transform_1, window_bounds = array<i64: 32, 128>}, {pipeline_mode = #tpu.pipeline_mode<synchronous>, transform_indices = @transform_2, window_bounds = array<i64: 1, 32>}, {pipeline_mode = #tpu.pipeline_mode<synchronous>, transform_indices = @transform_3, window_bounds = array<i64: 32, 1>}, {pipeline_mode = #tpu.pipeline_mode<synchronous>, transform_indices = @transform_4, window_bounds = array<i64: 1, 128>}, {pipeline_mode = #tpu.pipeline_mode<synchronous>, transform_indices = @transform_5, window_bounds = array<i64: 8, 32>}, {pipeline_mode = #tpu.pipeline_mode<synchronous>, transform_indices = @transform_6, window_bounds = array<i64: 32, 1>}, {pipeline_mode = #tpu.pipeline_mode<synchronous>, transform_indices = @transform_7, window_bounds = array<i64: 1, 128>}]} {
    %c0 = arith.constant 0 : index
    %c0_0 = arith.constant 0 : index
    %0 = vector.load %arg2[%c0, %c0_0] : memref<32x128xf32, #tpu.memory_space<vmem>>, vector<32x128xf32>
    %c0_1 = arith.constant 0 : index
    %c0_2 = arith.constant 0 : index
    %1 = vector.load %arg4[%c0_1, %c0_2] : memref<32x1xf32, #tpu.memory_space<vmem>>, vector<32x1xf32>
    %2 = vector.broadcast %1 : vector<32x1xf32> to vector<32x128xf32>
    %3 = arith.mulf %0, %2 : vector<32x128xf32>
    %cst = arith.constant dense<0.000000e+00> : vector<128xf32>
    %4 = vector.multi_reduction <add>, %3, %cst [0] : vector<32x128xf32> to vector<128xf32>
    %5 = vector.shape_cast %4 : vector<128xf32> to vector<1x128xf32>
    %6 = arith.mulf %5, %5 : vector<1x128xf32>
    %7 = vector.shape_cast %6 : vector<1x128xf32> to vector<1x1x128xf32>
    %cst_3 = arith.constant dense<0.000000e+00> : vector<1xf32>
    %8 = vector.multi_reduction <add>, %7, %cst_3 [1, 2] : vector<1x1x128xf32> to vector<1xf32>
    %9 = vector.shape_cast %8 : vector<1xf32> to vector<1x1x1xf32>
    %10 = vector.extract %9[0, 0, 0] : f32 from vector<1x1x1xf32>
    %11 = math.sqrt %10 : f32
    %cst_4 = arith.constant 9.99999996E-13 : f32
    %12 = arith.addf %11, %cst_4 : f32
    %cst_5 = arith.constant 1.000000e+00 : f32
    %13 = arith.divf %cst_5, %12 : f32
    %14 = vector.broadcast %13 : f32 to vector<1x128xf32>
    %15 = arith.mulf %5, %14 : vector<1x128xf32>
    %16 = vector.broadcast %15 : vector<1x128xf32> to vector<32x128xf32>
    %17 = arith.mulf %0, %16 : vector<32x128xf32>
    %cst_6 = arith.constant dense<0.000000e+00> : vector<32xf32>
    %18 = vector.multi_reduction <add>, %17, %cst_6 [1] : vector<32x128xf32> to vector<32xf32>
    %19 = vector.shape_cast %18 : vector<32xf32> to vector<32x1xf32>
    %20 = arith.mulf %19, %19 : vector<32x1xf32>
    %21 = vector.shape_cast %20 : vector<32x1xf32> to vector<1x32x1xf32>
    %cst_7 = arith.constant dense<0.000000e+00> : vector<1xf32>
    %22 = vector.multi_reduction <add>, %21, %cst_7 [1, 2] : vector<1x32x1xf32> to vector<1xf32>
    %23 = vector.shape_cast %22 : vector<1xf32> to vector<1x1x1xf32>
    %24 = vector.extract %23[0, 0, 0] : f32 from vector<1x1x1xf32>
    %25 = math.sqrt %24 : f32
    %cst_8 = arith.constant 9.99999996E-13 : f32
    %26 = arith.addf %25, %cst_8 : f32
    %cst_9 = arith.constant 1.000000e+00 : f32
    %27 = arith.divf %cst_9, %26 : f32
    %28 = vector.broadcast %27 : f32 to vector<32x1xf32>
    %29 = arith.mulf %19, %28 : vector<32x1xf32>
    %30 = arith.mulf %29, %19 : vector<32x1xf32>
    %31 = vector.shape_cast %30 : vector<32x1xf32> to vector<1x32x1xf32>
    %cst_10 = arith.constant dense<0.000000e+00> : vector<1xf32>
    %32 = vector.multi_reduction <add>, %31, %cst_10 [1, 2] : vector<1x32x1xf32> to vector<1xf32>
    %33 = vector.shape_cast %32 : vector<1xf32> to vector<1x1x1xf32>
    %34 = vector.extract %33[0, 0, 0] : f32 from vector<1x1x1xf32>
    %cst_11 = arith.constant 1.000000e+00 : f32
    %35 = arith.divf %cst_11, %34 : f32
    %c0_12 = arith.constant 0 : index
    %c0_13 = arith.constant 0 : index
    %36 = vector.load %arg1[%c0_12, %c0_13] : memref<8x128xf32, #tpu.memory_space<vmem>>, vector<8x128xf32>
    %cst_14 = arith.constant dense<0.000000e+00> : vector<8x32xf32>
    %37 = tpu.matmul %36, %0, %cst_14 {dimension_numbers = #tpu.dot_dimension_numbers<[1], [1], [0], [0], [0, 0, 1, 0], [], []>} : vector<8x128xf32>, vector<32x128xf32>, vector<8x32xf32> -> vector<8x32xf32>
    %38 = vector.broadcast %35 : f32 to vector<8x32xf32>
    %39 = arith.mulf %37, %38 : vector<8x32xf32>
    %c0_15 = arith.constant 0 : index
    %c0_16 = arith.constant 0 : index
    %40 = vector.load %arg3[%c0_15, %c0_16] : memref<1x32xf32, #tpu.memory_space<vmem>>, vector<1x32xf32>
    %41 = vector.broadcast %40 : vector<1x32xf32> to vector<8x32xf32>
    %42 = arith.addf %39, %41 : vector<8x32xf32>
    %c0_17 = arith.constant 0 : index
    %c0_18 = arith.constant 0 : index
    %43 = vector.load %arg6[%c0_17, %c0_18] : memref<8x32xf32, #tpu.memory_space<vmem>>, vector<8x32xf32>
    tpu.vector_store %arg6[%c0_17, %c0_18], %42 {strides = array<i32>} : memref<8x32xf32, #tpu.memory_space<vmem>>, vector<8x32xf32>,
    %c0_19 = arith.constant 0 : index
    %c0_20 = arith.constant 0 : index
    %44 = vector.load %arg7[%c0_19, %c0_20] : memref<32x1xf32, #tpu.memory_space<vmem>>, vector<32x1xf32>
    tpu.vector_store %arg7[%c0_19, %c0_20], %29 {strides = array<i32>} : memref<32x1xf32, #tpu.memory_space<vmem>>, vector<32x1xf32>,
    %c0_21 = arith.constant 0 : index
    %c0_22 = arith.constant 0 : index
    %45 = vector.load %arg8[%c0_21, %c0_22] : memref<1x128xf32, #tpu.memory_space<vmem>>, vector<1x128xf32>
    tpu.vector_store %arg8[%c0_21, %c0_22], %15 {strides = array<i32>} : memref<1x128xf32, #tpu.memory_space<vmem>>, vector<1x128xf32>,
    return
  }
  func.func @transform_0(%arg0: i32) -> (i32, i32) {
    %c0_i32 = arith.constant 0 : i32
    %c0_i32_0 = arith.constant 0 : i32
    %c0_i32_1 = arith.constant 0 : i32
    return %c0_i32, %c0_i32_0 : i32, i32
  }
  func.func @transform_1(%arg0: i32) -> (i32, i32) {
    %c0_i32 = arith.constant 0 : i32
    %c0_i32_0 = arith.constant 0 : i32
    %c0_i32_1 = arith.constant 0 : i32
    return %c0_i32, %c0_i32_0 : i32, i32
  }
  func.func @transform_2(%arg0: i32) -> (i32, i32) {
    %c0_i32 = arith.constant 0 : i32
    %c0_i32_0 = arith.constant 0 : i32
    %c0_i32_1 = arith.constant 0 : i32
    return %c0_i32, %c0_i32_0 : i32, i32
  }
  func.func @transform_3(%arg0: i32) -> (i32, i32) {
    %c0_i32 = arith.constant 0 : i32
    %c0_i32_0 = arith.constant 0 : i32
    %c0_i32_1 = arith.constant 0 : i32
    return %c0_i32, %c0_i32_0 : i32, i32
  }
  func.func @transform_4(%arg0: i32) -> (i32, i32) {
    %c0_i32 = arith.constant 0 : i32
    %c0_i32_0 = arith.constant 0 : i32
    %c0_i32_1 = arith.constant 0 : i32
    return %c0_i32, %c0_i32_0 : i32, i32
  }
  func.func @transform_5(%arg0: i32) -> (i32, i32) {
    %c0_i32 = arith.constant 0 : i32
    %c0_i32_0 = arith.constant 0 : i32
    %c0_i32_1 = arith.constant 0 : i32
    return %c0_i32, %c0_i32_0 : i32, i32
  }
  func.func @transform_6(%arg0: i32) -> (i32, i32) {
    %c0_i32 = arith.constant 0 : i32
    %c0_i32_0 = arith.constant 0 : i32
    %c0_i32_1 = arith.constant 0 : i32
    return %c0_i32, %c0_i32_0 : i32, i32
  }
  func.func @transform_7(%arg0: i32) -> (i32, i32) {
    %c0_i32 = arith.constant 0 : i32
    %c0_i32_0 = arith.constant 0 : i32
    %c0_i32_1 = arith.constant 0 : i32
    return %c0_i32, %c0_i32_0 : i32, i32
  }
}

</mosaic_0001>

<bundles_post_ra>
// kernel: spectral_norm_linear_forward.1
= control target key start
LH: loop header
LB: loop body
LE: loop exit
PB: predicated region body
PF: predicated region fallthrough
CT: control target
= control target key end

     0   :  { %v356_v2 = vmov 0   ;;  %s490_s0 = inlined_call_operand.vmem [shape: f32[8,128], index: 0, kind: input, shape index: {}]   ;;  %s491_s1 = inlined_call_operand.vmem [shape: f32[32,128], index: 1, kind: input, shape index: {}]   ;;  %s492_s2 = inlined_call_operand.vmem [shape: f32[1,32], index: 2, kind: input, shape index: {}]   ;;  %s493_s3 = inlined_call_operand.vmem [shape: f32[32,1], index: 3, kind: input, shape index: {}, may-alias: {3,6}]   ;;  %s494_s4 = inlined_call_operand.vmem [shape: f32[1,128], index: 4, kind: input, shape index: {}, may-alias: {4,7}]   ;;  %s495_s5 = inlined_call_operand.hbm [shape: f32[8,32], index: 5, kind: output, shape index: {0}]   ;;  %s496_s6 = inlined_call_operand.vmem [shape: f32[32,1], index: 6, kind: output, shape index: {1}, may-alias: {3,6}]   ;;  %s497_s7 = inlined_call_operand.vmem [shape: f32[1,128], index: 7, kind: output, shape index: {2}, may-alias: {4,7}]  }
   0x1   :  { %v30_v0 = vld [vmem:[%s493_s3 + $0x10] sm:$0xff]  ;;  %v28_v1 = vld [vmem:[%s493_s3] sm:$0xff]  ;;  %321 = vset.pattern.permute.xlu1 %v356_v2  ;;  %320 = vset.pattern.permute.xlu0 %v356_v2 }
   0x2   :  { %44 = vperm.xlu1 %321, %v30_v0   ;;  %34 = vperm.xlu0 %320, %v28_v1  }
   0x3   :  { %13 = vsyncpa [#allocation3], 0  ;;  %v31_v3 = vld [vmem:[%s493_s3 + $0x18] sm:$0xff]  ;;  %v29_v4 = vld [vmem:[%s493_s3 + $0x8] sm:$0xff]  ;;  %vm66_vm0 = vcmask 1040384   ;;  %vm108_vm3 = vcmask 7168  }
   0x4   :  { %v416_v7 = vld [vmem:[%s491_s1] sm:$0xff]  ;;  %v421_v8 = vld [vmem:[%s491_s1 + $0x8] sm:$0xff]  ;;  %v426_v9 = vld [vmem:[%s491_s1 + $0x10] sm:$0xff]  ;;  %vm358_vm6 = vmmov 0   ;;  %s360_s11 = smov [#allocation2]   ;;  %vm247_vm7 = vcmask 261120  }
   0x5   :  { %v433_v14 = vld [vmem:[%s491_s1 + $0x18] sm:$0xff]  ;;  %s260_s12 = sshll.u32 %s360_s11, 4  ;;  %s261_s12 = int_to_ptr.vmem [resolvable:$true] %s260_s12 }
   0x6   :  { %49 = vperm.xlu1 %321, %v31_v3   ;;  %39 = vperm.xlu0 %320, %v29_v4   ;;  %s332_s13 = scalar_lea.vmem %s261_s12, 128  ;;  %p337_p1 = scmp.lt.s32.totalorder %s261_s12, %s261_s12 }
   0x7   :  { %p333_p0 = scmp.ne.s32.totalorder %s261_s12, %s332_s13  ;;  %p338_p2 = scmp.lt.s32.totalorder %s332_s13, %s332_s13 }
   0x9   :  { %p339_p3 = por %p338_p2, %p337_p1 }
   0xb   :  { %p340_p4 = pnand %p339_p3, %p333_p0 }
  0x81   :  { %v45_v5 = vpop.permute.xlu1 %44  ;;  %v35_v6 = vpop.permute.xlu0 %34 }
  0x82   :  { %v52_v11 = vmul.f32 %v35_v6, %v416_v7  ;;  %v54_v15 = vmul.f32 %v45_v5, %v426_v9 }
  0x85   :  { %v40_v10 = vpop.permute.xlu0 %39  ;;  %v50_v13 = vpop.permute.xlu1 %49 }
  0x86   :  { %v53_v12 = vmul.f32 %v40_v10, %v421_v8  ;;  %v55_v17 = vmul.f32 %v50_v13, %v433_v14 }
  0x88   :  { %v56_v16 = vadd.f32 %v53_v12, %v52_v11 }
  0x8a   :  { %v57_v18 = vadd.f32 %v56_v16, %v54_v15  ;;  %v294_v16 = vpack.c.bf16 %v421_v8, %v416_v7 }
  0x8c   :  { %v58_v19 = vadd.f32 %v57_v18, %v55_v17  ;;  %v357_v18 = vmov 0.0|0.0  }
  0x8d   :  { %293 = vmatprep.subr.bf16.mxu0 %v357_v18 }
  0x8e   :  { %v59_v20 = vrot.slane %v58_v19, 4  ;;  %295 = vmatpush3.bf16.xpose.msra.mxu0 %v294_v16 }
  0x8f   :  { %296 = vmatprep.subr.bf16.mxu0 %v357_v18 }
  0x90   :  { %v60_v21 = vadd.f32 %v59_v20, %v58_v19  ;;  %v359_v19 = vmov 0.0   ;;  %v297_v20 = vpack.c.bf16 %v433_v14, %v426_v9 }
  0x91   :  { %290 = vmatprep.mubr.msk.f32.mxu0 %vm358_vm6, %v359_v19 }
  0x92   :  { %v61_v22 = vrot.slane %v60_v21, 2 }
  0x94   :  { %v62_v23 = vadd.f32 %v61_v22, %v60_v21  ;;  %v166_v21 = vld [vmem:[%s490_s0] sm:$0xff] }
  0x96   :  { %v63_v24 = vrot.slane %v62_v23, 1  ;;  %298 = vmatpush3.bf16.xpose.msra.mxu0 %v297_v20 }
  0x98   :  { %v64_v25 = vadd.f32 %v63_v24, %v62_v23 }
  0x9a   :  { %v65_v26 = vmul.f32 %v64_v25, %v64_v25 }
  0x9c   :  { %v67_v27 = vsel %vm66_vm0, %v65_v26, 0.0 }
  0x9d   :  { %68 = vadd.xlane.f32.xlu0 %v67_v27  ;;  %291 = vmatmul.mubr.f32.vlgmr.msra.gmra.mrb[0].mxu0 %v166_v21 }
 0x12a   :  { %v69_v28 = vpop.xlane.xlu0 %68 }
 0x12b   :  { %v70_v29 = vrot.slane %v69_v28, 4 }
 0x12d   :  { %v71_v30 = vadd.f32 %v70_v29, %v69_v28 }
 0x12f   :  { %v72_v31 = vrot.slane %v71_v30, 2 }
 0x131   :  { %v73_v32 = vadd.f32 %v72_v31, %v71_v30 }
 0x133   :  { %v74_v33 = vrot.slane %v73_v32, 1 }
 0x135   :  { %v75_v34 = vadd.f32 %v74_v33, %v73_v32 }
 0x137   :  { %299 = vpush %v75_v34 }
 0x168   :  { %s300_s1 = spop %299 }
 0x169   :  { %v77_v35 = vstv %s300_s1 }
 0x16a   :  { %322 = vrsqrt.f32 %v77_v35  ;;  %vm80_vm1 = vcmp.eq.f32.partialorder %v77_v35, inf  ;;  %v83_v38 = vand.u32 2147483648, %v77_v35  ;;  %vm82_vm2 = vcmp.eq.f32.partialorder %v77_v35, 0.0 }
 0x174   :  { %v323_v36 = vpop.eup %322 }
 0x175   :  { %v79_v37 = vmul.f32 %v323_v36, %v77_v35  ;;  %v233_v36 = vpop.f32.mrb[0].mxu0 }
 0x177   :  { %v81_v39 = vsel %vm80_vm1, %v77_v35, %v79_v37  ;;  %v292_v37 = vpop.f32.mrb[1].mxu0 }
 0x178   :  { %v84_v40 = vsel %vm82_vm2, %v83_v38, %v81_v39 }
 0x179   :  { %301 = vpush %v84_v40 }
 0x1aa   :  { %s302_s15 = spop %301 }
 0x1ab   :  { %s86_s16 = sadd.f32 1e-12, %s302_s15 }
 0x1ad   :  { %v87_v41 = vstv %s86_s16 }
 0x1ae   :  { %324 = vrcp.f32 %v87_v41 }
 0x1b8   :  { %v325_v42 = vpop.eup %324 }
 0x1b9   :  { %303 = vpush %v325_v42 }
 0x1ea   :  { %s304_s17 = spop %303 }
 0x1eb   :  { %v90_v43 = vstv %s304_s17 }
 0x1ec   :  { %v91_v44 = vmul.f32 %v90_v43, %v64_v25 }
 0x1ee   :  { %253 = vst [vmem:[%s497_s7] sm:$0x1] %v91_v44  ;;  %v93_v45 = vmul.f32 %v91_v44, %v421_v8  ;;  %v92_v46 = vmul.f32 %v91_v44, %v416_v7  ;;  %v94_v47 = vmul.f32 %v91_v44, %v426_v9  ;;  %v95_v48 = vmul.f32 %v91_v44, %v433_v14 }
 0x1f0   :  { %98 = vadd.xlane.f32.xlu0 %v93_v45  ;;  %96 = vadd.xlane.f32.xlu1 %v92_v46 }
 0x1f4   :  { %100 = vadd.xlane.f32.xlu0 %v94_v47  ;;  %102 = vadd.xlane.f32.xlu1 %v95_v48  ;;  %v276_v48 = vld [vmem:[%s492_s2] ss:$0 sm:$0xff] }
 0x27d   :  { %v99_v49 = vpop.xlane.xlu0 %98  ;;  %v97_v50 = vpop.xlane.xlu1 %96 }
 0x27e   :  { %v105_v51 = vmul.f32 %v99_v49, %v99_v49  ;;  %v104_v52 = vmul.f32 %v97_v50, %v97_v50 }
 0x280   :  { %v110_v53 = vsel %vm108_vm3, %v105_v51, 0.0  ;;  %v109_v54 = vsel %vm108_vm3, %v104_v52, 0.0 }
 0x281   :  { %v101_v55 = vpop.xlane.xlu0 %100  ;;  %v103_v56 = vpop.xlane.xlu1 %102  ;;  %v111_v59 = vadd.f32 %v110_v53, %v109_v54 }
 0x282   :  { %v106_v57 = vmul.f32 %v101_v55, %v101_v55  ;;  %v107_v58 = vmul.f32 %v103_v56, %v103_v56 }
 0x284   :  { %v112_v60 = vsel %vm108_vm3, %v106_v57, 0.0  ;;  %v114_v62 = vsel %vm108_vm3, %v107_v58, 0.0 }
 0x285   :  { %v113_v61 = vadd.f32 %v112_v60, %v111_v59 }
 0x287   :  { %v115_v63 = vadd.f32 %v114_v62, %v113_v61 }
 0x289   :  { %116 = vadd.xlane.f32.xlu0 %v115_v63 }
 0x316   :  { %v117_v0 = vpop.xlane.xlu0 %116 }
 0x317   :  { %v118_v1 = vrot.slane %v117_v0, 4 }
 0x319   :  { %v119_v2 = vadd.f32 %v118_v1, %v117_v0 }
 0x31b   :  { %v120_v3 = vrot.slane %v119_v2, 2 }
 0x31d   :  { %v121_v4 = vadd.f32 %v120_v3, %v119_v2 }
 0x31f   :  { %v122_v5 = vrot.slane %v121_v4, 1 }
 0x321   :  { %v123_v6 = vadd.f32 %v122_v5, %v121_v4 }
 0x323   :  { %305 = vpush %v123_v6 }
 0x354   :  { %s306_s7 = spop %305 }
 0x355   :  { %v125_v10 = vstv %s306_s7 }
 0x356   :  { %326 = vrsqrt.f32 %v125_v10  ;;  %vm128_vm4 = vcmp.eq.f32.partialorder %v125_v10, inf  ;;  %v131_v13 = vand.u32 2147483648, %v125_v10  ;;  %vm130_vm5 = vcmp.eq.f32.partialorder %v125_v10, 0.0 }
 0x360   :  { %v327_v11 = vpop.eup %326 }
 0x361   :  { %v127_v12 = vmul.f32 %v327_v11, %v125_v10 }
 0x363   :  { %v129_v15 = vsel %vm128_vm4, %v125_v10, %v127_v12 }
 0x364   :  { %v132_v17 = vsel %vm130_vm5, %v131_v13, %v129_v15 }
 0x365   :  { %307 = vpush %v132_v17 }
 0x396   :  { %s308_s22 = spop %307 }
 0x397   :  { %s134_s23 = sadd.f32 1e-12, %s308_s22 }
 0x399   :  { %v135_v7 = vstv %s134_s23 }
 0x39a   :  { %328 = vrcp.f32 %v135_v7 }
 0x3a4   :  { %v329_v8 = vpop.eup %328 }
 0x3a5   :  { %309 = vpush %v329_v8 }
 0x3d6   :  { %s310_s24 = spop %309 }
 0x3d7   :  { %v138_v22 = vstv %s310_s24 }
 0x3d8   :  { %v139_v23 = vmul.f32 %v138_v22, %v97_v50  ;;  %v140_v24 = vmul.f32 %v138_v22, %v99_v49  ;;  %v141_v25 = vmul.f32 %v138_v22, %v101_v55  ;;  %v142_v26 = vmul.f32 %v138_v22, %v103_v56 }
 0x3da   :  { %v143_v27 = vmul.f32 %v139_v23, %v97_v50  ;;  %v144_v9 = vmul.f32 %v140_v24, %v99_v49  ;;  %249 = vst.msk [vmem:[%s496_s6] sm:$0xff] %vm108_vm3, %v139_v23  ;;  %250 = vst.msk [vmem:[%s496_s6 + $0x8] sm:$0xff] %vm108_vm3, %v140_v24  ;;  %v145_v14 = vmul.f32 %v141_v25, %v101_v55 }
 0x3db   :  { %251 = vst.msk [vmem:[%s496_s6 + $0x10] sm:$0xff] %vm108_vm3, %v141_v25  ;;  %252 = vst.msk [vmem:[%s496_s6 + $0x18] sm:$0xff] %vm108_vm3, %v142_v26  ;;  %v146_v28 = vmul.f32 %v142_v26, %v103_v56 }
 0x3dc   :  { %v147_v29 = vsel %vm108_vm3, %v143_v27, 0.0  ;;  %v148_v30 = vsel %vm108_vm3, %v144_v9, 0.0  ;;  %v150_v32 = vsel %vm108_vm3, %v145_v14, 0.0 }
 0x3dd   :  { %v149_v31 = vadd.f32 %v148_v30, %v147_v29  ;;  %v152_v34 = vsel %vm108_vm3, %v146_v28, 0.0 }
 0x3df   :  { %v151_v33 = vadd.f32 %v150_v32, %v149_v31 }
 0x3e1   :  { %v153_v35 = vadd.f32 %v152_v34, %v151_v33 }
 0x3e3   :  { %154 = vadd.xlane.f32.xlu1 %v153_v35 }
 0x470   :  { %v155_v38 = vpop.xlane.xlu1 %154 }
 0x471   :  { %v156_v39 = vrot.slane %v155_v38, 4 }
 0x473   :  { %v157_v40 = vadd.f32 %v156_v39, %v155_v38 }
 0x475   :  { %v158_v41 = vrot.slane %v157_v40, 2 }
 0x477   :  { %v159_v42 = vadd.f32 %v158_v41, %v157_v40 }
 0x479   :  { %v160_v43 = vrot.slane %v159_v42, 1 }
 0x47b   :  { %v161_v44 = vadd.f32 %v160_v43, %v159_v42 }
 0x47d   :  { %311 = vpush %v161_v44 }
 0x4ae   :  { %s312_s6 = spop %311 }
 0x4af   :  { %v163_v45 = vstv %s312_s6 }
 0x4b0   :  { %330 = vrcp.f32 %v163_v45 }
 0x4ba   :  { %v331_v46 = vpop.eup %330 }
 0x4bb   :  { %313 = vpush %v331_v46 }
 0x4ec   :  { %s314_s8 = spop %313 }
 0x4ed   :  { %v237_v47 = vstv %s314_s8 }
 0x4ee   :  { %v238_v49 = vmul.f32 %v237_v47, %v233_v36 }
 0x4f0   :  { %v246_v50 = vadd.f32 %v276_v48, %v238_v49 }
 0x4f2   :  { %248 = vst.msk [vmem:[#allocation2] sm:$0xff] %vm247_vm7, %v246_v50 }
 0x4f3   :  { %343 = shalt.err (!%p340_p4)
}
 0x4f4   :  { %s344_s1 = scalar_lea.hbm %s495_s5, 128 }
 0x4f5   :  { %p345_p5 = scmp.ne.s32.totalorder %s495_s5, %s344_s1  ;;  %p348_p6 = scmp.lt.u32.totalorder %s344_s1, %s495_s5 }
 0x4f7   :  { %p350_p7 = pnand %p348_p6, %p345_p5 }
 0x4f9   :  { %353 = shalt.err (!%p350_p7)
}
 0x4fa   :  { %263 = dma.vmem_to_hbm [thread:$0]  %s261_s12, 128, %s495_s5, [#allocation3]  }
 0x4fb   :  { %354 = dma.done.wait [#allocation3], 128  }
 0x4fc   :  { %355 = vsyncadd [#allocation3], 4294967168 }
 0x4fd   :  { %275 = vsyncpa [#allocation3], 1 }

</bundles_post_ra>
